<compile_context>
chip_gen: v6e
topology: v6e:2x2x1
jax: 0.10.0
libtpu: 0.0.40
codegen_flags: <defaults>
</compile_context>

<pallas_src>
import functools

import jax
import jax.numpy as jnp
from jax.experimental import pallas as pl
from jax.experimental.pallas import tpu as pltpu

HIDDEN = 8


def _round_up(n, m):
    return ((n + m - 1) // m) * m


def _dqn_kernel(x_ref, p1_ref, p2_ref, p3_ref, o_ref, *, hidden):
    # x_ref: (tb, states+1), last column is a constant 1 -> fc1 bias folded into
    # the matmul. p2/p3 carry their bias as the last row (broadcast-add).
    x = x_ref[...]

    # fc1 (+bias via ones-column) + relu
    h = jnp.dot(x, p1_ref[...], preferred_element_type=jnp.float32)
    h = jnp.maximum(h, 0.0)

    # fc2 + bias + relu
    h = jnp.dot(h, p2_ref[:hidden, :], preferred_element_type=jnp.float32)
    h = jnp.maximum(h + p2_ref[hidden:hidden + 1, :], 0.0)

    # fc3 + bias (no activation), true-width output store
    o = jnp.dot(h, p3_ref[:hidden, :], preferred_element_type=jnp.float32)
    o_ref[...] = (o + p3_ref[hidden:hidden + 1, :]).astype(o_ref.dtype)


def pack_params(params):
    """One-time pre-pack: each layer becomes a single [W; b] array (bias = last row)."""
    w1, b1, w2, b2, w3, b3 = params
    p1 = jnp.concatenate([w1, b1.reshape(1, -1)], axis=0)   # (states+1, H)
    p2 = jnp.concatenate([w2, b2.reshape(1, -1)], axis=0)   # (H+1, H)
    p3 = jnp.concatenate([w3, b3.reshape(1, -1)], axis=0)   # (H+1, outputs)
    return p1, p2, p3


def _choose_tile(batch, single_step_cap=2048, stream_tile=1024):
    rb = _round_up(max(batch, 1), 8)
    # Small/medium batch: one grid step, no dead trailing tile.
    if rb <= single_step_cap:
        return rb
    # Replay-scale batch: stream in large tiles (amortizes per-step overhead,
    # ~85% of HBM roofline at >=1024-row tiles).
    return stream_tile


def dqn_forward(x, packed, *, single_step_cap=2048, stream_tile=1024):
    """Fused DQN forward. x: (batch, states) f32. Returns (batch, outputs) f32."""
    p1, p2, p3 = packed
    states = p1.shape[0] - 1
    hidden = p1.shape[1]
    outputs = p3.shape[1]
    batch = x.shape[0]

    # Fold fc1 bias: append a constant-1 column to x (free in the activation DMA).
    x_aug = jnp.concatenate(
        [x, jnp.ones((batch, 1), dtype=x.dtype)], axis=-1)   # (batch, states+1)

    tb = _choose_tile(batch, single_step_cap, stream_tile)
    padded = _round_up(batch, tb)
    if padded != batch:
        x_aug = jnp.pad(x_aug, ((0, padded - batch), (0, 0)))
    grid = (padded // tb,)

    kernel = functools.partial(_dqn_kernel, hidden=hidden)
    out = pl.pallas_call(
        kernel,
        out_shape=jax.ShapeDtypeStruct((padded, outputs), jnp.float32),
        grid=grid,
        in_specs=[
            pl.BlockSpec((tb, states + 1), lambda i: (i, 0)),  # streamed activations
            pl.BlockSpec(p1.shape, lambda i: (0, 0)),          # VMEM-resident weights
            pl.BlockSpec(p2.shape, lambda i: (0, 0)),
            pl.BlockSpec(p3.shape, lambda i: (0, 0)),
        ],
        out_specs=pl.BlockSpec((tb, outputs), lambda i: (i, 0)),  # true-width store
        compiler_params=pltpu.CompilerParams(
            dimension_semantics=("parallel",)),
    )(x_aug, p1, p2, p3)

    if padded != batch:
        out = out[:batch]
    return out


def init_params(key, states, outputs, hidden=HIDDEN):
    """Deterministic init mimicking PyTorch nn.Linear default U(-1/sqrt(fan_in), ...)."""
    def linear(k, fan_in, fan_out):
        kw, kb = jax.random.split(k)
        bound = 1.0 / jnp.sqrt(jnp.float32(fan_in))
        w = jax.random.uniform(kw, (fan_in, fan_out), jnp.float32, -bound, bound)
        b = jax.random.uniform(kb, (fan_out,), jnp.float32, -bound, bound)
        return w, b

    k1, k2, k3 = jax.random.split(key, 3)
    w1, b1 = linear(k1, states, hidden)
    w2, b2 = linear(k2, hidden, hidden)
    w3, b3 = linear(k3, hidden, outputs)
    return (w1, b1, w2, b2, w3, b3)


def dqn_reference(x, params):
    w1, b1, w2, b2, w3, b3 = params
    h = jnp.maximum(x @ w1 + b1, 0.0)
    h = jnp.maximum(h @ w2 + b2, 0.0)
    return h @ w3 + b3


if __name__ == "__main__":
    states, outputs = 4, 2
    key = jax.random.PRNGKey(0)
    kx, kp, kx2 = jax.random.split(key, 3)
    params = init_params(kp, states, outputs)
    packed = pack_params(params)            # packed once, reused across calls

    fwd = jax.jit(dqn_forward)

    # Replay-batch sized input -> single 304-row grid step (no dead trailing tile).
    batch = 300
    x = jax.random.normal(kx, (batch, states), jnp.float32)
    out = jax.block_until_ready(fwd(x, packed))
    ref = dqn_reference(x, params)
    assert out.shape == (batch, outputs)
    assert jnp.allclose(out, ref, atol=1e-4, rtol=1e-4)

    # Tiny single-env-step case (already 8-row aligned, zero padding).
    x2 = jax.random.normal(kx2, (8, states), jnp.float32)
    out2 = jax.block_until_ready(fwd(x2, packed))
    ref2 = dqn_reference(x2, params)
    assert out2.shape == (8, outputs)
    assert jnp.allclose(out2, ref2, atol=1e-4, rtol=1e-4)

    print("KERNEL_OK")
</pallas_src>

<mosaic_0001>
module attributes {stable_mosaic.version = 11 : i64} {
  func.func @_dqn_kernel(%arg0: i32, %arg1: memref<304x5xf32, #tpu.memory_space<vmem>>, %arg2: memref<5x8xf32, #tpu.memory_space<vmem>>, %arg3: memref<9x8xf32, #tpu.memory_space<vmem>>, %arg4: memref<9x2xf32, #tpu.memory_space<vmem>>, %arg5: memref<304x2xf32, #tpu.memory_space<vmem>>) attributes {dimension_semantics = [#tpu.dimension_semantics<parallel>], iteration_bounds = array<i64: 1>, scalar_prefetch = 0 : i64, scratch_operands = 0 : i64, tpu.core_type = #tpu.core_type<tc>, window_params = [{transform_indices = @transform_0, window_bounds = array<i64: 304, 5>}, {pipeline_mode = #tpu.pipeline_mode<synchronous>, transform_indices = @transform_1, window_bounds = array<i64: 5, 8>}, {pipeline_mode = #tpu.pipeline_mode<synchronous>, transform_indices = @transform_2, window_bounds = array<i64: 9, 8>}, {pipeline_mode = #tpu.pipeline_mode<synchronous>, transform_indices = @transform_3, window_bounds = array<i64: 9, 2>}, {transform_indices = @transform_4, window_bounds = array<i64: 304, 2>}]} {
    %c0 = arith.constant 0 : index
    %c0_0 = arith.constant 0 : index
    %0 = vector.load %arg1[%c0, %c0_0] : memref<304x5xf32, #tpu.memory_space<vmem>>, vector<304x5xf32>
    %c0_1 = arith.constant 0 : index
    %c0_2 = arith.constant 0 : index
    %1 = vector.load %arg2[%c0_1, %c0_2] : memref<5x8xf32, #tpu.memory_space<vmem>>, vector<5x8xf32>
    %cst = arith.constant dense<0.000000e+00> : vector<304x8xf32>
    %2 = tpu.matmul %0, %1, %cst {dimension_numbers = #tpu.dot_dimension_numbers<[1], [0], [0], [1], [0, 0, 1, 1], [], []>} : vector<304x5xf32>, vector<5x8xf32>, vector<304x8xf32> -> vector<304x8xf32>
    %cst_3 = arith.constant 0.000000e+00 : f32
    %3 = vector.broadcast %cst_3 : f32 to vector<304x8xf32>
    %4 = arith.maximumf %2, %3 : vector<304x8xf32>
    %c0_4 = arith.constant 0 : index
    %c0_5 = arith.constant 0 : index
    %5 = vector.load %arg3[%c0_4, %c0_5] : memref<9x8xf32, #tpu.memory_space<vmem>>, vector<8x8xf32>
    %cst_6 = arith.constant dense<0.000000e+00> : vector<304x8xf32>
    %6 = tpu.matmul %4, %5, %cst_6 {dimension_numbers = #tpu.dot_dimension_numbers<[1], [0], [0], [1], [0, 0, 1, 1], [], []>} : vector<304x8xf32>, vector<8x8xf32>, vector<304x8xf32> -> vector<304x8xf32>
    %c8 = arith.constant 8 : index
    %c0_7 = arith.constant 0 : index
    %7 = vector.load %arg3[%c8, %c0_7] : memref<9x8xf32, #tpu.memory_space<vmem>>, vector<1x8xf32>
    %8 = vector.broadcast %7 : vector<1x8xf32> to vector<304x8xf32>
    %9 = arith.addf %6, %8 : vector<304x8xf32>
    %cst_8 = arith.constant 0.000000e+00 : f32
    %10 = vector.broadcast %cst_8 : f32 to vector<304x8xf32>
    %11 = arith.maximumf %9, %10 : vector<304x8xf32>
    %c0_9 = arith.constant 0 : index
    %c0_10 = arith.constant 0 : index
    %12 = vector.load %arg4[%c0_9, %c0_10] : memref<9x2xf32, #tpu.memory_space<vmem>>, vector<8x2xf32>
    %cst_11 = arith.constant dense<0.000000e+00> : vector<304x2xf32>
    %13 = tpu.matmul %11, %12, %cst_11 {dimension_numbers = #tpu.dot_dimension_numbers<[1], [0], [0], [1], [0, 0, 1, 1], [], []>} : vector<304x8xf32>, vector<8x2xf32>, vector<304x2xf32> -> vector<304x2xf32>
    %c8_12 = arith.constant 8 : index
    %c0_13 = arith.constant 0 : index
    %14 = vector.load %arg4[%c8_12, %c0_13] : memref<9x2xf32, #tpu.memory_space<vmem>>, vector<1x2xf32>
    %15 = vector.broadcast %14 : vector<1x2xf32> to vector<304x2xf32>
    %16 = arith.addf %13, %15 : vector<304x2xf32>
    %c0_14 = arith.constant 0 : index
    %c0_15 = arith.constant 0 : index
    %17 = vector.load %arg5[%c0_14, %c0_15] : memref<304x2xf32, #tpu.memory_space<vmem>>, vector<304x2xf32>
    tpu.vector_store %arg5[%c0_14, %c0_15], %16 {strides = array<i32>} : memref<304x2xf32, #tpu.memory_space<vmem>>, vector<304x2xf32>,
    return
  }
  func.func @transform_0(%arg0: i32) -> (i32, i32) {
    %c0_i32 = arith.constant 0 : i32
    %c0_i32_0 = arith.constant 0 : i32
    return %arg0, %c0_i32 : i32, i32
  }
  func.func @transform_1(%arg0: i32) -> (i32, i32) {
    %c0_i32 = arith.constant 0 : i32
    %c0_i32_0 = arith.constant 0 : i32
    %c0_i32_1 = arith.constant 0 : i32
    return %c0_i32, %c0_i32_0 : i32, i32
  }
  func.func @transform_2(%arg0: i32) -> (i32, i32) {
    %c0_i32 = arith.constant 0 : i32
    %c0_i32_0 = arith.constant 0 : i32
    %c0_i32_1 = arith.constant 0 : i32
    return %c0_i32, %c0_i32_0 : i32, i32
  }
  func.func @transform_3(%arg0: i32) -> (i32, i32) {
    %c0_i32 = arith.constant 0 : i32
    %c0_i32_0 = arith.constant 0 : i32
    %c0_i32_1 = arith.constant 0 : i32
    return %c0_i32, %c0_i32_0 : i32, i32
  }
  func.func @transform_4(%arg0: i32) -> (i32, i32) {
    %c0_i32 = arith.constant 0 : i32
    %c0_i32_0 = arith.constant 0 : i32
    return %arg0, %c0_i32 : i32, i32
  }
}

</mosaic_0001>

<bundles_post_ra>
// kernel: dqn_forward.1
= control target key start
LH: loop header
LB: loop body
LE: loop exit
PB: predicated region body
PF: predicated region fallthrough
CT: control target
= control target key end

     0   :  { %vm171_vm0 = vcmask 1044480   ;;  %vm56_vm1 = vcmask 39936   ;;  %vm474_vm2 = vcmask 64512   ;;  %vm1257_vm3 = vcmask 15360   ;;  %s2219_s1 = inlined_call_operand.vmem [shape: f32[5,8], index: 1, kind: input, shape index: {}]   ;;  %s2220_s0 = inlined_call_operand.vmem [shape: f32[304,5], index: 0, kind: input, shape index: {}]   ;;  %s2221_s2 = inlined_call_operand.vmem [shape: f32[9,8], index: 2, kind: input, shape index: {}]   ;;  %s2222_s3 = inlined_call_operand.vmem [shape: f32[9,2], index: 3, kind: input, shape index: {}]   ;;  %s2223_s4 = inlined_call_operand.vmem [shape: f32[304,2], index: 4, kind: output, shape index: {}]  }
   0x1   :  { %v55_v0 = vld [vmem:[%s2219_s1] sm:$0x1f]  ;;  %v18_v2 = vld [vmem:[%s2220_s0 + $0x8] sm:$0xff]  ;;  %v19_v3 = vld [vmem:[%s2220_s0 + $0x10] sm:$0xff] }
   0x2   :  { %v17_v1 = vld [vmem:[%s2220_s0] sm:$0xff]  ;;  %1534 = vmatprep.subr.msk.mxu0 %vm171_vm0, %v55_v0  ;;  %1711 = vmatprep.subr.msk.mxu1 %vm171_vm0, %v55_v0  ;;  %v20_v4 = vld [vmem:[%s2220_s0 + $0x18] sm:$0xff]  ;;  %v38_v7 = vld [vmem:[%s2220_s0 + $0xa8] sm:$0xff] }
   0x3   :  { %1536 = vmatprep.mubr.msk.f32.mxu0 %vm56_vm1, %v17_v1  ;;  %1535 = vmatpush3.msk.msra.mxu0 %vm171_vm0, %v55_v0  ;;  %v21_v5 = vld [vmem:[%s2220_s0 + $0x20] sm:$0xff]  ;;  %v39_v8 = vld [vmem:[%s2220_s0 + $0xb0] sm:$0xff]  ;;  %v22_v9 = vld [vmem:[%s2220_s0 + $0x28] sm:$0xff] }
   0x4   :  { %1537 = vmatmul.mubr.msk.f32.vlgmr.msra.gmra.mxu0 %vm56_vm1, %v18_v2  ;;  %1712 = vmatpush3.msk.msra.mxu1 %vm171_vm0, %v55_v0  ;;  %v37_v6 = vld [vmem:[%s2220_s0 + $0xa0] sm:$0xff]  ;;  %v23_v10 = vld [vmem:[%s2220_s0 + $0x30] sm:$0xff]  ;;  %v40_v11 = vld [vmem:[%s2220_s0 + $0xb8] sm:$0xff] }
   0x5   :  { %1539 = vmatprep.mubr.msk.f32.mxu0 %vm56_vm1, %v19_v3  ;;  %1566 = vmatprep.mubr.msk.f32.mxu1 %vm56_vm1, %v37_v6  ;;  %v41_v12 = vld [vmem:[%s2220_s0 + $0xc0] sm:$0xff]  ;;  %v24_v13 = vld [vmem:[%s2220_s0 + $0x38] sm:$0xff]  ;;  %v42_v16 = vld [vmem:[%s2220_s0 + $0xc8] sm:$0xff] }
   0x6   :  { %1567 = vmatmul.mubr.msk.f32.vlgmr.msra.gmra.mxu1 %vm56_vm1, %v38_v7  ;;  %v25_v14 = vld [vmem:[%s2220_s0 + $0x40] sm:$0xff]  ;;  %v43_v17 = vld [vmem:[%s2220_s0 + $0xd0] sm:$0xff]  ;;  %v26_v18 = vld [vmem:[%s2220_s0 + $0x48] sm:$0xff] }
   0x7   :  { %1569 = vmatprep.mubr.msk.f32.mxu1 %vm56_vm1, %v39_v8  ;;  %v468_v15 = vld [vmem:[%s2221_s2] sm:$0xff]  ;;  %v27_v19 = vld [vmem:[%s2220_s0 + $0x50] sm:$0xff]  ;;  %v44_v20 = vld [vmem:[%s2220_s0 + $0xd8] sm:$0xff] }
   0x8   :  { %1540 = vmatmul.mubr.msk.f32.gmra.mxu0 %vm56_vm1, %v20_v4  ;;  %1593 = vmatprep.subr.mxu1 %v468_v15  ;;  %v45_v21 = vld [vmem:[%s2220_s0 + $0xe0] sm:$0xff]  ;;  %v28_v22 = vld [vmem:[%s2220_s0 + $0x58] sm:$0xff]  ;;  %v46_v24 = vld [vmem:[%s2220_s0 + $0xe8] sm:$0xff] }
   0x9   :  { %1542 = vmatprep.mubr.msk.f32.mxu0 %vm56_vm1, %v21_v5  ;;  %1594 = vmatpush3.msra.mxu1 %v468_v15  ;;  %v29_v23 = vld [vmem:[%s2220_s0 + $0x60] sm:$0xff]  ;;  %v47_v25 = vld [vmem:[%s2220_s0 + $0xf0] sm:$0xff]  ;;  %v30_v26 = vld [vmem:[%s2220_s0 + $0x68] sm:$0xff] }
   0xa   :  { %1570 = vmatmul.mubr.msk.f32.gmra.mxu1 %vm56_vm1, %v40_v11  ;;  %v31_v27 = vld [vmem:[%s2220_s0 + $0x70] sm:$0xff]  ;;  %v48_v28 = vld [vmem:[%s2220_s0 + $0xf8] sm:$0xff]  ;;  %v49_v29 = vld [vmem:[%s2220_s0 + $0x100] sm:$0xff] }
   0xb   :  { %1572 = vmatprep.mubr.msk.f32.mxu1 %vm56_vm1, %v41_v12  ;;  %v32_v30 = vld [vmem:[%s2220_s0 + $0x78] sm:$0xff]  ;;  %v33_v31 = vld [vmem:[%s2220_s0 + $0x80] sm:$0xff]  ;;  %v50_v32 = vld [vmem:[%s2220_s0 + $0x108] sm:$0xff] }
   0xc   :  { %1543 = vmatmul.mubr.msk.f32.gmra.mxu0 %vm56_vm1, %v22_v9  ;;  %v51_v33 = vld [vmem:[%s2220_s0 + $0x110] sm:$0xff]  ;;  %v34_v34 = vld [vmem:[%s2220_s0 + $0x88] sm:$0xff]  ;;  %v52_v36 = vld [vmem:[%s2220_s0 + $0x118] sm:$0xff] }
   0xd   :  { %1545 = vmatprep.mubr.msk.f32.mxu0 %vm56_vm1, %v23_v10  ;;  %v35_v35 = vld [vmem:[%s2220_s0 + $0x90] sm:$0xff]  ;;  %v53_v37 = vld [vmem:[%s2220_s0 + $0x120] sm:$0xff]  ;;  %v36_v38 = vld [vmem:[%s2220_s0 + $0x98] sm:$0xff] }
   0xe   :  { %1573 = vmatmul.mubr.msk.f32.gmra.mxu1 %vm56_vm1, %v42_v16  ;;  %v54_v39 = vld [vmem:[%s2220_s0 + $0x128] sm:$0xff]  ;;  %v882_v40 = vld [vmem:[%s2222_s3] sm:$0xff] }
   0xf   :  { %1575 = vmatprep.mubr.msk.f32.mxu1 %vm56_vm1, %v43_v17  ;;  %1652 = vmatprep.subr.mxu0 %v882_v40 }
  0x10   :  { %1546 = vmatmul.mubr.msk.f32.gmra.mxu0 %vm56_vm1, %v24_v13 }
  0x11   :  { %1548 = vmatprep.mubr.msk.f32.mxu0 %vm56_vm1, %v25_v14  ;;  %1653 = vmatpush3.msra.mxu0 %v882_v40 }
  0x12   :  { %1576 = vmatmul.mubr.msk.f32.gmra.mxu1 %vm56_vm1, %v44_v20 }
  0x13   :  { %1578 = vmatprep.mubr.msk.f32.mxu1 %vm56_vm1, %v45_v21 }
  0x14   :  { %1549 = vmatmul.mubr.msk.f32.gmra.mxu0 %vm56_vm1, %v26_v18 }
  0x15   :  { %1551 = vmatprep.mubr.msk.f32.mxu0 %vm56_vm1, %v27_v19 }
  0x16   :  { %1579 = vmatmul.mubr.msk.f32.gmra.mxu1 %vm56_vm1, %v46_v24 }
  0x17   :  { %1581 = vmatprep.mubr.msk.f32.mxu1 %vm56_vm1, %v47_v25 }
  0x18   :  { %1552 = vmatmul.mubr.msk.f32.gmra.mxu0 %vm56_vm1, %v28_v22 }
  0x19   :  { %1554 = vmatprep.mubr.msk.f32.mxu0 %vm56_vm1, %v29_v23 }
  0x1a   :  { %1582 = vmatmul.mubr.msk.f32.gmra.mxu1 %vm56_vm1, %v48_v28 }
  0x1b   :  { %1584 = vmatprep.mubr.msk.f32.mxu1 %vm56_vm1, %v49_v29 }
  0x1c   :  { %1555 = vmatmul.mubr.msk.f32.gmra.mxu0 %vm56_vm1, %v30_v26 }
  0x1d   :  { %1557 = vmatprep.mubr.msk.f32.mxu0 %vm56_vm1, %v31_v27 }
  0x1e   :  { %1585 = vmatmul.mubr.msk.f32.gmra.mxu1 %vm56_vm1, %v50_v32 }
  0x1f   :  { %1587 = vmatprep.mubr.msk.f32.mxu1 %vm56_vm1, %v51_v33 }
  0x20   :  { %1558 = vmatmul.mubr.msk.f32.gmra.mxu0 %vm56_vm1, %v32_v30 }
  0x21   :  { %1560 = vmatprep.mubr.msk.f32.mxu0 %vm56_vm1, %v33_v31 }
  0x22   :  { %1588 = vmatmul.mubr.msk.f32.gmra.mxu1 %vm56_vm1, %v52_v36 }
  0x23   :  { %1590 = vmatprep.mubr.msk.f32.mxu1 %vm56_vm1, %v53_v37 }
  0x24   :  { %1561 = vmatmul.mubr.msk.f32.gmra.mxu0 %vm56_vm1, %v34_v34 }
  0x25   :  { %1563 = vmatprep.mubr.msk.f32.mxu0 %vm56_vm1, %v35_v35 }
  0x26   :  { %1591 = vmatmul.mubr.msk.f32.gmra.mxu1 %vm56_vm1, %v54_v39 }
  0x28   :  { %1564 = vmatmul.mubr.msk.f32.gmra.mxu0 %vm56_vm1, %v36_v38 }
  0xc4   :  { %v1538_v41 = vpop.f32.mrf.mxu0 }
  0xc5   :  { %v431_v44 = vmax.f32 %v1538_v41, 0.0 }
  0xc6   :  { %v241_v42 = vpop.f32.mrf.mxu0  ;;  %v1901_v47 = vpop.f32.mrf.mxu1 }
  0xc7   :  { %v430_v43 = vmax.f32 %v241_v42, 0.0  ;;  %v451_v30 = vmax.f32 %v1901_v47, 0.0 }
  0xc8   :  { %v1541_v45 = vpop.f32.mrf.mxu0  ;;  %v341_v51 = vpop.f32.mrf.mxu1 }
  0xc9   :  { %1595 = vmatprep.mubr.msk.f32.mxu1 %vm474_vm2, %v430_v43  ;;  %v433_v49 = vmax.f32 %v1541_v45, 0.0  ;;  %v450_v26 = vmax.f32 %v341_v51, 0.0 }
  0xca   :  { %v251_v46 = vpop.f32.mrf.mxu0  ;;  %1596 = vmatmul.mubr.msk.f32.vlgmr.msra.gmra.mxu1 %vm474_vm2, %v431_v44  ;;  %v1905_v53 = vpop.f32.mrf.mxu1 }
  0xcb   :  { %v432_v48 = vmax.f32 %v251_v46, 0.0  ;;  %v453_v33 = vmax.f32 %v1905_v53, 0.0  ;;  %v1946_v53 = vld [vmem:[%s2221_s2 + $0x8] ss:$0 sm:$0xff] }
  0xcc   :  { %v1544_v50 = vpop.f32.mrf.mxu0  ;;  %v351_v57 = vpop.f32.mrf.mxu1 }
  0xcd   :  { %1598 = vmatprep.mubr.msk.f32.mxu1 %vm474_vm2, %v432_v48  ;;  %v435_v55 = vmax.f32 %v1544_v50, 0.0  ;;  %v452_v29 = vmax.f32 %v351_v57, 0.0 }
  0xce   :  { %v261_v52 = vpop.f32.mrf.mxu0  ;;  %1599 = vmatmul.mubr.msk.f32.gmra.mxu1 %vm474_vm2, %v433_v49  ;;  %v1574_v62 = vpop.f32.mrf.mxu1 }
  0xcf   :  { %v434_v54 = vmax.f32 %v261_v52, 0.0  ;;  %v455_v36 = vmax.f32 %v1574_v62, 0.0 }
  0xd0   :  { %v1547_v56 = vpop.f32.mrf.mxu0  ;;  %v361_v3 = vpop.f32.mrf.mxu1 }
  0xd1   :  { %1601 = vmatprep.mubr.msk.f32.mxu1 %vm474_vm2, %v434_v54  ;;  %v437_v60 = vmax.f32 %v1547_v56, 0.0  ;;  %v454_v32 = vmax.f32 %v361_v3, 0.0 }
  0xd2   :  { %v271_v58 = vpop.f32.mrf.mxu0  ;;  %1602 = vmatmul.mubr.msk.f32.gmra.mxu1 %vm474_vm2, %v435_v55  ;;  %v1577_v8 = vpop.f32.mrf.mxu1 }
  0xd3   :  { %v436_v59 = vmax.f32 %v271_v58, 0.0  ;;  %v457_v39 = vmax.f32 %v1577_v8, 0.0 }
  0xd4   :  { %v1550_v61 = vpop.f32.mrf.mxu0  ;;  %v371_v13 = vpop.f32.mrf.mxu1 }
  0xd5   :  { %1604 = vmatprep.mubr.msk.f32.mxu1 %vm474_vm2, %v436_v59  ;;  %v439_v1 = vmax.f32 %v1550_v61, 0.0  ;;  %v456_v35 = vmax.f32 %v371_v13, 0.0 }
  0xd6   :  { %v281_v63 = vpop.f32.mrf.mxu0  ;;  %1605 = vmatmul.mubr.msk.f32.gmra.mxu1 %vm474_vm2, %v437_v60  ;;  %v1580_v18 = vpop.f32.mrf.mxu1 }
  0xd7   :  { %v438_v0 = vmax.f32 %v281_v63, 0.0  ;;  %v459_v42 = vmax.f32 %v1580_v18, 0.0 }
  0xd8   :  { %v1553_v2 = vpop.f32.mrf.mxu0  ;;  %v381_v23 = vpop.f32.mrf.mxu1 }
  0xd9   :  { %1607 = vmatprep.mubr.msk.f32.mxu1 %vm474_vm2, %v438_v0  ;;  %v441_v6 = vmax.f32 %v1553_v2, 0.0  ;;  %v458_v38 = vmax.f32 %v381_v23, 0.0 }
  0xda   :  { %v291_v4 = vpop.f32.mrf.mxu0  ;;  %1608 = vmatmul.mubr.msk.f32.gmra.mxu1 %vm474_vm2, %v439_v1  ;;  %v1583_v28 = vpop.f32.mrf.mxu1 }
  0xdb   :  { %v440_v5 = vmax.f32 %v291_v4, 0.0  ;;  %v461_v45 = vmax.f32 %v1583_v28, 0.0 }
  0xdc   :  { %v1556_v7 = vpop.f32.mrf.mxu0  ;;  %v391_v31 = vpop.f32.mrf.mxu1 }
  0xdd   :  { %1610 = vmatprep.mubr.msk.f32.mxu1 %vm474_vm2, %v440_v5  ;;  %v443_v11 = vmax.f32 %v1556_v7, 0.0  ;;  %v460_v41 = vmax.f32 %v391_v31, 0.0 }
  0xde   :  { %v301_v9 = vpop.f32.mrf.mxu0  ;;  %1611 = vmatmul.mubr.msk.f32.gmra.mxu1 %vm474_vm2, %v441_v6  ;;  %v1586_v34 = vpop.f32.mrf.mxu1 }
  0xdf   :  { %v442_v10 = vmax.f32 %v301_v9, 0.0  ;;  %v463_v48 = vmax.f32 %v1586_v34, 0.0 }
  0xe0   :  { %v1559_v12 = vpop.f32.mrf.mxu0  ;;  %v401_v37 = vpop.f32.mrf.mxu1 }
  0xe1   :  { %1613 = vmatprep.mubr.msk.f32.mxu1 %vm474_vm2, %v442_v10  ;;  %v445_v16 = vmax.f32 %v1559_v12, 0.0  ;;  %v462_v44 = vmax.f32 %v401_v37, 0.0 }
  0xe2   :  { %v311_v14 = vpop.f32.mrf.mxu0  ;;  %1614 = vmatmul.mubr.msk.f32.gmra.mxu1 %vm474_vm2, %v443_v11  ;;  %v1589_v40 = vpop.f32.mrf.mxu1 }
  0xe3   :  { %v444_v15 = vmax.f32 %v311_v14, 0.0  ;;  %v465_v51 = vmax.f32 %v1589_v40, 0.0 }
  0xe4   :  { %v1562_v17 = vpop.f32.mrf.mxu0  ;;  %v411_v43 = vpop.f32.mrf.mxu1 }
  0xe5   :  { %1616 = vmatprep.mubr.msk.f32.mxu1 %vm474_vm2, %v444_v15  ;;  %v447_v21 = vmax.f32 %v1562_v17, 0.0  ;;  %v464_v47 = vmax.f32 %v411_v43, 0.0 }
  0xe6   :  { %v321_v19 = vpop.f32.mrf.mxu0  ;;  %1617 = vmatmul.mubr.msk.f32.gmra.mxu1 %vm474_vm2, %v445_v16  ;;  %v1592_v46 = vpop.f32.mrf.mxu1 }
  0xe7   :  { %v446_v20 = vmax.f32 %v321_v19, 0.0  ;;  %v467_v52 = vmax.f32 %v1592_v46, 0.0 }
  0xe8   :  { %v1565_v22 = vpop.f32.mrf.mxu0  ;;  %v421_v49 = vpop.f32.mrf.mxu1 }
  0xe9   :  { %1619 = vmatprep.mubr.msk.f32.mxu1 %vm474_vm2, %v446_v20  ;;  %v449_v27 = vmax.f32 %v1565_v22, 0.0  ;;  %v466_v50 = vmax.f32 %v421_v49, 0.0 }
  0xea   :  { %v331_v24 = vpop.f32.mrf.mxu0  ;;  %1620 = vmatmul.mubr.msk.f32.gmra.mxu1 %vm474_vm2, %v447_v21 }
  0xeb   :  { %v448_v25 = vmax.f32 %v331_v24, 0.0 }
  0xed   :  { %1622 = vmatprep.mubr.msk.f32.mxu1 %vm474_vm2, %v448_v25 }
  0xee   :  { %1623 = vmatmul.mubr.msk.f32.gmra.mxu1 %vm474_vm2, %v449_v27 }
  0xef   :  { %1625 = vmatprep.mubr.msk.f32.mxu1 %vm474_vm2, %v450_v26 }
  0xf2   :  { %1626 = vmatmul.mubr.msk.f32.gmra.mxu1 %vm474_vm2, %v451_v30 }
  0xf3   :  { %1628 = vmatprep.mubr.msk.f32.mxu1 %vm474_vm2, %v452_v29 }
  0xf6   :  { %1629 = vmatmul.mubr.msk.f32.gmra.mxu1 %vm474_vm2, %v453_v33 }
  0xf7   :  { %1631 = vmatprep.mubr.msk.f32.mxu1 %vm474_vm2, %v454_v32 }
  0xfa   :  { %1632 = vmatmul.mubr.msk.f32.gmra.mxu1 %vm474_vm2, %v455_v36 }
  0xfb   :  { %1634 = vmatprep.mubr.msk.f32.mxu1 %vm474_vm2, %v456_v35 }
  0xfe   :  { %1635 = vmatmul.mubr.msk.f32.gmra.mxu1 %vm474_vm2, %v457_v39 }
  0xff   :  { %1637 = vmatprep.mubr.msk.f32.mxu1 %vm474_vm2, %v458_v38 }
 0x102   :  { %1638 = vmatmul.mubr.msk.f32.gmra.mxu1 %vm474_vm2, %v459_v42 }
 0x103   :  { %1640 = vmatprep.mubr.msk.f32.mxu1 %vm474_vm2, %v460_v41 }
 0x106   :  { %1641 = vmatmul.mubr.msk.f32.gmra.mxu1 %vm474_vm2, %v461_v45 }
 0x107   :  { %1643 = vmatprep.mubr.msk.f32.mxu1 %vm474_vm2, %v462_v44 }
 0x10a   :  { %1644 = vmatmul.mubr.msk.f32.gmra.mxu1 %vm474_vm2, %v463_v48 }
 0x10b   :  { %1646 = vmatprep.mubr.msk.f32.mxu1 %vm474_vm2, %v464_v47 }
 0x10e   :  { %1647 = vmatmul.mubr.msk.f32.gmra.mxu1 %vm474_vm2, %v465_v51 }
 0x10f   :  { %1649 = vmatprep.mubr.msk.f32.mxu1 %vm474_vm2, %v466_v50 }
 0x112   :  { %1650 = vmatmul.mubr.msk.f32.gmra.mxu1 %vm474_vm2, %v467_v52 }
 0x18a   :  { %v1597_v54 = vpop.f32.mrf.mxu1 }
 0x18b   :  { %v661_v55 = vadd.f32 %v1597_v54, %v1946_v53 }
 0x18c   :  { %v655_v56 = vpop.f32.mrf.mxu1 }
 0x18d   :  { %v656_v57 = vadd.f32 %v1946_v53, %v655_v56  ;;  %v845_v60 = vmax.f32 %v661_v55, 0.0 }
 0x18e   :  { %v1600_v58 = vpop.f32.mrf.mxu1 }
 0x18f   :  { %v844_v59 = vmax.f32 %v656_v57, 0.0  ;;  %v671_v61 = vadd.f32 %v1600_v58, %v1946_v53 }
 0x190   :  { %v665_v62 = vpop.f32.mrf.mxu1 }
 0x191   :  { %v666_v63 = vadd.f32 %v1946_v53, %v665_v62  ;;  %1654 = vmatprep.mubr.msk.f32.mxu0 %vm474_vm2, %v844_v59  ;;  %v847_v2 = vmax.f32 %v671_v61, 0.0 }
 0x192   :  { %v1603_v0 = vpop.f32.mrf.mxu1  ;;  %1655 = vmatmul.mubr.msk.f32.vlgmr.msra.gmra.mxu0 %vm474_vm2, %v845_v60 }
 0x193   :  { %v846_v1 = vmax.f32 %v666_v63, 0.0  ;;  %v681_v3 = vadd.f32 %v1603_v0, %v1946_v53 }
 0x194   :  { %v675_v4 = vpop.f32.mrf.mxu1 }
 0x195   :  { %v676_v5 = vadd.f32 %v1946_v53, %v675_v4  ;;  %1657 = vmatprep.mubr.msk.f32.mxu0 %vm474_vm2, %v846_v1  ;;  %v849_v8 = vmax.f32 %v681_v3, 0.0 }
 0x196   :  { %v1606_v6 = vpop.f32.mrf.mxu1  ;;  %1658 = vmatmul.mubr.msk.f32.gmra.mxu0 %vm474_vm2, %v847_v2 }
 0x197   :  { %v848_v7 = vmax.f32 %v676_v5, 0.0  ;;  %v691_v9 = vadd.f32 %v1606_v6, %v1946_v53 }
 0x198   :  { %v685_v10 = vpop.f32.mrf.mxu1 }
 0x199   :  { %v686_v11 = vadd.f32 %v1946_v53, %v685_v10  ;;  %1660 = vmatprep.mubr.msk.f32.mxu0 %vm474_vm2, %v848_v7  ;;  %v851_v14 = vmax.f32 %v691_v9, 0.0 }
 0x19a   :  { %v1609_v12 = vpop.f32.mrf.mxu1  ;;  %1661 = vmatmul.mubr.msk.f32.gmra.mxu0 %vm474_vm2, %v849_v8 }
 0x19b   :  { %v850_v13 = vmax.f32 %v686_v11, 0.0  ;;  %v701_v15 = vadd.f32 %v1609_v12, %v1946_v53 }
 0x19c   :  { %v695_v16 = vpop.f32.mrf.mxu1 }
 0x19d   :  { %v696_v17 = vadd.f32 %v1946_v53, %v695_v16  ;;  %1663 = vmatprep.mubr.msk.f32.mxu0 %vm474_vm2, %v850_v13  ;;  %v853_v20 = vmax.f32 %v701_v15, 0.0 }
 0x19e   :  { %v1612_v18 = vpop.f32.mrf.mxu1  ;;  %1664 = vmatmul.mubr.msk.f32.gmra.mxu0 %vm474_vm2, %v851_v14 }
 0x19f   :  { %v852_v19 = vmax.f32 %v696_v17, 0.0  ;;  %v711_v21 = vadd.f32 %v1612_v18, %v1946_v53 }
 0x1a0   :  { %v705_v22 = vpop.f32.mrf.mxu1 }
 0x1a1   :  { %v706_v23 = vadd.f32 %v1946_v53, %v705_v22  ;;  %1666 = vmatprep.mubr.msk.f32.mxu0 %vm474_vm2, %v852_v19  ;;  %v855_v26 = vmax.f32 %v711_v21, 0.0 }
 0x1a2   :  { %v1615_v24 = vpop.f32.mrf.mxu1  ;;  %1667 = vmatmul.mubr.msk.f32.gmra.mxu0 %vm474_vm2, %v853_v20 }
 0x1a3   :  { %v854_v25 = vmax.f32 %v706_v23, 0.0  ;;  %v721_v27 = vadd.f32 %v1615_v24, %v1946_v53 }
 0x1a4   :  { %v715_v28 = vpop.f32.mrf.mxu1 }
 0x1a5   :  { %v716_v29 = vadd.f32 %v1946_v53, %v715_v28  ;;  %1669 = vmatprep.mubr.msk.f32.mxu0 %vm474_vm2, %v854_v25  ;;  %v857_v32 = vmax.f32 %v721_v27, 0.0 }
 0x1a6   :  { %v1618_v30 = vpop.f32.mrf.mxu1  ;;  %1670 = vmatmul.mubr.msk.f32.gmra.mxu0 %vm474_vm2, %v855_v26 }
 0x1a7   :  { %v856_v31 = vmax.f32 %v716_v29, 0.0  ;;  %v731_v33 = vadd.f32 %v1618_v30, %v1946_v53 }
 0x1a8   :  { %v725_v34 = vpop.f32.mrf.mxu1 }
 0x1a9   :  { %v726_v35 = vadd.f32 %v1946_v53, %v725_v34  ;;  %1672 = vmatprep.mubr.msk.f32.mxu0 %vm474_vm2, %v856_v31  ;;  %v859_v38 = vmax.f32 %v731_v33, 0.0 }
 0x1aa   :  { %v1621_v36 = vpop.f32.mrf.mxu1  ;;  %1673 = vmatmul.mubr.msk.f32.gmra.mxu0 %vm474_vm2, %v857_v32 }
 0x1ab   :  { %v858_v37 = vmax.f32 %v726_v35, 0.0  ;;  %v741_v39 = vadd.f32 %v1621_v36, %v1946_v53 }
 0x1ac   :  { %v735_v40 = vpop.f32.mrf.mxu1 }
 0x1ad   :  { %v736_v41 = vadd.f32 %v1946_v53, %v735_v40  ;;  %1675 = vmatprep.mubr.msk.f32.mxu0 %vm474_vm2, %v858_v37  ;;  %v861_v44 = vmax.f32 %v741_v39, 0.0 }
 0x1ae   :  { %v1624_v42 = vpop.f32.mrf.mxu1  ;;  %1676 = vmatmul.mubr.msk.f32.gmra.mxu0 %vm474_vm2, %v859_v38 }
 0x1af   :  { %v860_v43 = vmax.f32 %v736_v41, 0.0  ;;  %v751_v45 = vadd.f32 %v1624_v42, %v1946_v53  ;;  %v2027_v41 = vld [vmem:[%s2222_s3 + $0x8] ss:$0 sm:$0xff] }
 0x1b0   :  { %v745_v46 = vpop.f32.mrf.mxu1 }
 0x1b1   :  { %v746_v47 = vadd.f32 %v1946_v53, %v745_v46  ;;  %1678 = vmatprep.mubr.msk.f32.mxu0 %vm474_vm2, %v860_v43  ;;  %v863_v50 = vmax.f32 %v751_v45, 0.0 }
 0x1b2   :  { %v1627_v48 = vpop.f32.mrf.mxu1  ;;  %1679 = vmatmul.mubr.msk.f32.gmra.mxu0 %vm474_vm2, %v861_v44 }
 0x1b3   :  { %v862_v49 = vmax.f32 %v746_v47, 0.0  ;;  %v761_v51 = vadd.f32 %v1627_v48, %v1946_v53 }
 0x1b4   :  { %v755_v52 = vpop.f32.mrf.mxu1 }
 0x1b5   :  { %v756_v54 = vadd.f32 %v1946_v53, %v755_v52  ;;  %1681 = vmatprep.mubr.msk.f32.mxu0 %vm474_vm2, %v862_v49  ;;  %v865_v57 = vmax.f32 %v761_v51, 0.0 }
 0x1b6   :  { %v1630_v55 = vpop.f32.mrf.mxu1  ;;  %1682 = vmatmul.mubr.msk.f32.gmra.mxu0 %vm474_vm2, %v863_v50 }
 0x1b7   :  { %v864_v56 = vmax.f32 %v756_v54, 0.0  ;;  %v771_v58 = vadd.f32 %v1630_v55, %v1946_v53 }
 0x1b8   :  { %v765_v59 = vpop.f32.mrf.mxu1 }
 0x1b9   :  { %v766_v60 = vadd.f32 %v1946_v53, %v765_v59  ;;  %1684 = vmatprep.mubr.msk.f32.mxu0 %vm474_vm2, %v864_v56  ;;  %v867_v63 = vmax.f32 %v771_v58, 0.0 }
 0x1ba   :  { %v1633_v61 = vpop.f32.mrf.mxu1  ;;  %1685 = vmatmul.mubr.msk.f32.gmra.mxu0 %vm474_vm2, %v865_v57 }
 0x1bb   :  { %v866_v62 = vmax.f32 %v766_v60, 0.0  ;;  %v781_v0 = vadd.f32 %v1633_v61, %v1946_v53 }
 0x1bc   :  { %v775_v1 = vpop.f32.mrf.mxu1 }
 0x1bd   :  { %v776_v2 = vadd.f32 %v1946_v53, %v775_v1  ;;  %1687 = vmatprep.mubr.msk.f32.mxu0 %vm474_vm2, %v866_v62  ;;  %v869_v5 = vmax.f32 %v781_v0, 0.0 }
 0x1be   :  { %v1636_v3 = vpop.f32.mrf.mxu1  ;;  %1688 = vmatmul.mubr.msk.f32.gmra.mxu0 %vm474_vm2, %v867_v63 }
 0x1bf   :  { %v868_v4 = vmax.f32 %v776_v2, 0.0  ;;  %v791_v6 = vadd.f32 %v1636_v3, %v1946_v53 }
 0x1c0   :  { %v785_v7 = vpop.f32.mrf.mxu1 }
 0x1c1   :  { %v786_v8 = vadd.f32 %v1946_v53, %v785_v7  ;;  %1690 = vmatprep.mubr.msk.f32.mxu0 %vm474_vm2, %v868_v4  ;;  %v871_v11 = vmax.f32 %v791_v6, 0.0 }
 0x1c2   :  { %v1639_v9 = vpop.f32.mrf.mxu1  ;;  %1691 = vmatmul.mubr.msk.f32.gmra.mxu0 %vm474_vm2, %v869_v5 }
 0x1c3   :  { %v870_v10 = vmax.f32 %v786_v8, 0.0  ;;  %v801_v12 = vadd.f32 %v1639_v9, %v1946_v53 }
 0x1c4   :  { %v795_v13 = vpop.f32.mrf.mxu1 }
 0x1c5   :  { %v796_v14 = vadd.f32 %v1946_v53, %v795_v13  ;;  %1693 = vmatprep.mubr.msk.f32.mxu0 %vm474_vm2, %v870_v10  ;;  %v873_v17 = vmax.f32 %v801_v12, 0.0 }
 0x1c6   :  { %v1642_v15 = vpop.f32.mrf.mxu1  ;;  %1694 = vmatmul.mubr.msk.f32.gmra.mxu0 %vm474_vm2, %v871_v11 }
 0x1c7   :  { %v872_v16 = vmax.f32 %v796_v14, 0.0  ;;  %v811_v18 = vadd.f32 %v1642_v15, %v1946_v53 }
 0x1c8   :  { %v805_v19 = vpop.f32.mrf.mxu1 }
 0x1c9   :  { %v806_v20 = vadd.f32 %v1946_v53, %v805_v19  ;;  %1696 = vmatprep.mubr.msk.f32.mxu0 %vm474_vm2, %v872_v16  ;;  %v875_v23 = vmax.f32 %v811_v18, 0.0 }
 0x1ca   :  { %v1645_v21 = vpop.f32.mrf.mxu1  ;;  %1697 = vmatmul.mubr.msk.f32.gmra.mxu0 %vm474_vm2, %v873_v17 }
 0x1cb   :  { %v874_v22 = vmax.f32 %v806_v20, 0.0  ;;  %v821_v24 = vadd.f32 %v1645_v21, %v1946_v53 }
 0x1cc   :  { %v815_v25 = vpop.f32.mrf.mxu1 }
 0x1cd   :  { %v816_v26 = vadd.f32 %v1946_v53, %v815_v25  ;;  %1699 = vmatprep.mubr.msk.f32.mxu0 %vm474_vm2, %v874_v22  ;;  %v877_v29 = vmax.f32 %v821_v24, 0.0 }
 0x1ce   :  { %v1648_v27 = vpop.f32.mrf.mxu1  ;;  %1700 = vmatmul.mubr.msk.f32.gmra.mxu0 %vm474_vm2, %v875_v23 }
 0x1cf   :  { %v876_v28 = vmax.f32 %v816_v26, 0.0  ;;  %v831_v30 = vadd.f32 %v1648_v27, %v1946_v53 }
 0x1d0   :  { %v825_v31 = vpop.f32.mrf.mxu1 }
 0x1d1   :  { %v826_v32 = vadd.f32 %v1946_v53, %v825_v31  ;;  %1702 = vmatprep.mubr.msk.f32.mxu0 %vm474_vm2, %v876_v28  ;;  %v879_v35 = vmax.f32 %v831_v30, 0.0 }
 0x1d2   :  { %v1651_v33 = vpop.f32.mrf.mxu1  ;;  %1703 = vmatmul.mubr.msk.f32.gmra.mxu0 %vm474_vm2, %v877_v29 }
 0x1d3   :  { %v878_v34 = vmax.f32 %v826_v32, 0.0  ;;  %v841_v36 = vadd.f32 %v1651_v33, %v1946_v53 }
 0x1d4   :  { %v835_v37 = vpop.f32.mrf.mxu1 }
 0x1d5   :  { %v836_v38 = vadd.f32 %v1946_v53, %v835_v37  ;;  %1705 = vmatprep.mubr.msk.f32.mxu0 %vm474_vm2, %v878_v34  ;;  %v881_v40 = vmax.f32 %v841_v36, 0.0 }
 0x1d6   :  { %1706 = vmatmul.mubr.msk.f32.gmra.mxu0 %vm474_vm2, %v879_v35 }
 0x1d7   :  { %v880_v39 = vmax.f32 %v836_v38, 0.0 }
 0x1d9   :  { %1708 = vmatprep.mubr.msk.f32.mxu0 %vm474_vm2, %v880_v39 }
 0x1da   :  { %1709 = vmatmul.mubr.msk.f32.gmra.mxu0 %vm474_vm2, %v881_v40 }
 0x252   :  { %v1656_v42 = vpop.f32.mrf.mxu0 }
 0x253   :  { %v1074_v43 = vadd.f32 %v1656_v42, %v2027_v41 }
 0x254   :  { %v1068_v53 = vpop.f32.mrf.mxu0 }
 0x255   :  { %1259 = vst.msk [vmem:[%s2223_s4 + $0x8] sm:$0xff] %vm1257_vm3, %v1074_v43  ;;  %v1069_v44 = vadd.f32 %v2027_v41, %v1068_v53 }
 0x256   :  { %v1659_v45 = vpop.f32.mrf.mxu0 }
 0x257   :  { %1258 = vst.msk [vmem:[%s2223_s4] sm:$0xff] %vm1257_vm3, %v1069_v44  ;;  %v1084_v46 = vadd.f32 %v1659_v45, %v2027_v41 }
 0x258   :  { %v1078_v47 = vpop.f32.mrf.mxu0 }
 0x259   :  { %1261 = vst.msk [vmem:[%s2223_s4 + $0x18] sm:$0xff] %vm1257_vm3, %v1084_v46  ;;  %v1079_v48 = vadd.f32 %v2027_v41, %v1078_v47 }
 0x25a   :  { %v1662_v49 = vpop.f32.mrf.mxu0 }
 0x25b   :  { %1260 = vst.msk [vmem:[%s2223_s4 + $0x10] sm:$0xff] %vm1257_vm3, %v1079_v48  ;;  %v1094_v50 = vadd.f32 %v1662_v49, %v2027_v41 }
 0x25c   :  { %v1088_v51 = vpop.f32.mrf.mxu0 }
 0x25d   :  { %1263 = vst.msk [vmem:[%s2223_s4 + $0x28] sm:$0xff] %vm1257_vm3, %v1094_v50  ;;  %v1089_v52 = vadd.f32 %v2027_v41, %v1088_v51 }
 0x25e   :  { %v1665_v54 = vpop.f32.mrf.mxu0 }
 0x25f   :  { %1262 = vst.msk [vmem:[%s2223_s4 + $0x20] sm:$0xff] %vm1257_vm3, %v1089_v52  ;;  %v1104_v55 = vadd.f32 %v1665_v54, %v2027_v41 }
 0x260   :  { %v1098_v56 = vpop.f32.mrf.mxu0 }
 0x261   :  { %1265 = vst.msk [vmem:[%s2223_s4 + $0x38] sm:$0xff] %vm1257_vm3, %v1104_v55  ;;  %v1099_v57 = vadd.f32 %v2027_v41, %v1098_v56 }
 0x262   :  { %v1668_v58 = vpop.f32.mrf.mxu0 }
 0x263   :  { %1264 = vst.msk [vmem:[%s2223_s4 + $0x30] sm:$0xff] %vm1257_vm3, %v1099_v57  ;;  %v1114_v59 = vadd.f32 %v1668_v58, %v2027_v41 }
 0x264   :  { %v1108_v60 = vpop.f32.mrf.mxu0 }
 0x265   :  { %1267 = vst.msk [vmem:[%s2223_s4 + $0x48] sm:$0xff] %vm1257_vm3, %v1114_v59  ;;  %v1109_v61 = vadd.f32 %v2027_v41, %v1108_v60 }
 0x266   :  { %v1671_v62 = vpop.f32.mrf.mxu0 }
 0x267   :  { %1266 = vst.msk [vmem:[%s2223_s4 + $0x40] sm:$0xff] %vm1257_vm3, %v1109_v61  ;;  %v1124_v63 = vadd.f32 %v1671_v62, %v2027_v41 }
 0x268   :  { %v1118_v0 = vpop.f32.mrf.mxu0 }
 0x269   :  { %1269 = vst.msk [vmem:[%s2223_s4 + $0x58] sm:$0xff] %vm1257_vm3, %v1124_v63  ;;  %v1119_v1 = vadd.f32 %v2027_v41, %v1118_v0 }
 0x26a   :  { %v1674_v2 = vpop.f32.mrf.mxu0 }
 0x26b   :  { %1268 = vst.msk [vmem:[%s2223_s4 + $0x50] sm:$0xff] %vm1257_vm3, %v1119_v1  ;;  %v1134_v3 = vadd.f32 %v1674_v2, %v2027_v41 }
 0x26c   :  { %v1128_v4 = vpop.f32.mrf.mxu0 }
 0x26d   :  { %1271 = vst.msk [vmem:[%s2223_s4 + $0x68] sm:$0xff] %vm1257_vm3, %v1134_v3  ;;  %v1129_v5 = vadd.f32 %v2027_v41, %v1128_v4 }
 0x26e   :  { %v1677_v6 = vpop.f32.mrf.mxu0 }
 0x26f   :  { %1270 = vst.msk [vmem:[%s2223_s4 + $0x60] sm:$0xff] %vm1257_vm3, %v1129_v5  ;;  %v1144_v7 = vadd.f32 %v1677_v6, %v2027_v41 }
 0x270   :  { %v1138_v8 = vpop.f32.mrf.mxu0 }
 0x271   :  { %1273 = vst.msk [vmem:[%s2223_s4 + $0x78] sm:$0xff] %vm1257_vm3, %v1144_v7  ;;  %v1139_v9 = vadd.f32 %v2027_v41, %v1138_v8 }
 0x272   :  { %v1680_v10 = vpop.f32.mrf.mxu0 }
 0x273   :  { %1272 = vst.msk [vmem:[%s2223_s4 + $0x70] sm:$0xff] %vm1257_vm3, %v1139_v9  ;;  %v1154_v11 = vadd.f32 %v1680_v10, %v2027_v41 }
 0x274   :  { %v1148_v12 = vpop.f32.mrf.mxu0 }
 0x275   :  { %1275 = vst.msk [vmem:[%s2223_s4 + $0x88] sm:$0xff] %vm1257_vm3, %v1154_v11  ;;  %v1149_v13 = vadd.f32 %v2027_v41, %v1148_v12 }
 0x276   :  { %v1683_v14 = vpop.f32.mrf.mxu0 }
 0x277   :  { %1274 = vst.msk [vmem:[%s2223_s4 + $0x80] sm:$0xff] %vm1257_vm3, %v1149_v13  ;;  %v1164_v15 = vadd.f32 %v1683_v14, %v2027_v41 }
 0x278   :  { %v1158_v16 = vpop.f32.mrf.mxu0 }
 0x279   :  { %1277 = vst.msk [vmem:[%s2223_s4 + $0x98] sm:$0xff] %vm1257_vm3, %v1164_v15  ;;  %v1159_v17 = vadd.f32 %v2027_v41, %v1158_v16 }
 0x27a   :  { %v1686_v18 = vpop.f32.mrf.mxu0 }
 0x27b   :  { %1276 = vst.msk [vmem:[%s2223_s4 + $0x90] sm:$0xff] %vm1257_vm3, %v1159_v17  ;;  %v1174_v19 = vadd.f32 %v1686_v18, %v2027_v41 }
 0x27c   :  { %v1168_v20 = vpop.f32.mrf.mxu0 }
 0x27d   :  { %1279 = vst.msk [vmem:[%s2223_s4 + $0xa8] sm:$0xff] %vm1257_vm3, %v1174_v19  ;;  %v1169_v21 = vadd.f32 %v2027_v41, %v1168_v20 }
 0x27e   :  { %v1689_v22 = vpop.f32.mrf.mxu0 }
 0x27f   :  { %1278 = vst.msk [vmem:[%s2223_s4 + $0xa0] sm:$0xff] %vm1257_vm3, %v1169_v21  ;;  %v1184_v23 = vadd.f32 %v1689_v22, %v2027_v41 }
 0x280   :  { %v1178_v24 = vpop.f32.mrf.mxu0 }
 0x281   :  { %1281 = vst.msk [vmem:[%s2223_s4 + $0xb8] sm:$0xff] %vm1257_vm3, %v1184_v23  ;;  %v1179_v25 = vadd.f32 %v2027_v41, %v1178_v24 }
 0x282   :  { %v1692_v26 = vpop.f32.mrf.mxu0 }
 0x283   :  { %1280 = vst.msk [vmem:[%s2223_s4 + $0xb0] sm:$0xff] %vm1257_vm3, %v1179_v25  ;;  %v1194_v27 = vadd.f32 %v1692_v26, %v2027_v41 }
 0x284   :  { %v1188_v28 = vpop.f32.mrf.mxu0 }
 0x285   :  { %1283 = vst.msk [vmem:[%s2223_s4 + $0xc8] sm:$0xff] %vm1257_vm3, %v1194_v27  ;;  %v1189_v29 = vadd.f32 %v2027_v41, %v1188_v28 }
 0x286   :  { %v1695_v30 = vpop.f32.mrf.mxu0 }
 0x287   :  { %1282 = vst.msk [vmem:[%s2223_s4 + $0xc0] sm:$0xff] %vm1257_vm3, %v1189_v29  ;;  %v1204_v31 = vadd.f32 %v1695_v30, %v2027_v41 }
 0x288   :  { %v1198_v32 = vpop.f32.mrf.mxu0 }
 0x289   :  { %1285 = vst.msk [vmem:[%s2223_s4 + $0xd8] sm:$0xff] %vm1257_vm3, %v1204_v31  ;;  %v1199_v33 = vadd.f32 %v2027_v41, %v1198_v32 }
 0x28a   :  { %v1698_v34 = vpop.f32.mrf.mxu0 }
 0x28b   :  { %1284 = vst.msk [vmem:[%s2223_s4 + $0xd0] sm:$0xff] %vm1257_vm3, %v1199_v33  ;;  %v1214_v35 = vadd.f32 %v1698_v34, %v2027_v41 }
 0x28c   :  { %v1208_v36 = vpop.f32.mrf.mxu0 }
 0x28d   :  { %1287 = vst.msk [vmem:[%s2223_s4 + $0xe8] sm:$0xff] %vm1257_vm3, %v1214_v35  ;;  %v1209_v37 = vadd.f32 %v2027_v41, %v1208_v36 }
 0x28e   :  { %v1701_v38 = vpop.f32.mrf.mxu0 }
 0x28f   :  { %1286 = vst.msk [vmem:[%s2223_s4 + $0xe0] sm:$0xff] %vm1257_vm3, %v1209_v37  ;;  %v1224_v39 = vadd.f32 %v1701_v38, %v2027_v41 }
 0x290   :  { %v1218_v40 = vpop.f32.mrf.mxu0 }
 0x291   :  { %1289 = vst.msk [vmem:[%s2223_s4 + $0xf8] sm:$0xff] %vm1257_vm3, %v1224_v39  ;;  %v1219_v42 = vadd.f32 %v2027_v41, %v1218_v40 }
 0x292   :  { %v1704_v43 = vpop.f32.mrf.mxu0 }
 0x293   :  { %1288 = vst.msk [vmem:[%s2223_s4 + $0xf0] sm:$0xff] %vm1257_vm3, %v1219_v42  ;;  %v1234_v53 = vadd.f32 %v1704_v43, %v2027_v41 }
 0x294   :  { %v1228_v44 = vpop.f32.mrf.mxu0 }
 0x295   :  { %1291 = vst.msk [vmem:[%s2223_s4 + $0x108] sm:$0xff] %vm1257_vm3, %v1234_v53  ;;  %v1229_v45 = vadd.f32 %v2027_v41, %v1228_v44 }
 0x296   :  { %v1707_v46 = vpop.f32.mrf.mxu0 }
 0x297   :  { %1290 = vst.msk [vmem:[%s2223_s4 + $0x100] sm:$0xff] %vm1257_vm3, %v1229_v45  ;;  %v1244_v47 = vadd.f32 %v1707_v46, %v2027_v41 }
 0x298   :  { %v1238_v48 = vpop.f32.mrf.mxu0 }
 0x299   :  { %1293 = vst.msk [vmem:[%s2223_s4 + $0x118] sm:$0xff] %vm1257_vm3, %v1244_v47  ;;  %v1239_v49 = vadd.f32 %v2027_v41, %v1238_v48 }
 0x29a   :  { %v1710_v50 = vpop.f32.mrf.mxu0 }
 0x29b   :  { %1292 = vst.msk [vmem:[%s2223_s4 + $0x110] sm:$0xff] %vm1257_vm3, %v1239_v49  ;;  %v1254_v51 = vadd.f32 %v1710_v50, %v2027_v41 }
 0x29c   :  { %v1248_v52 = vpop.f32.mrf.mxu0 }
 0x29d   :  { %1295 = vst.msk [vmem:[%s2223_s4 + $0x128] sm:$0xff] %vm1257_vm3, %v1254_v51  ;;  %v1249_v54 = vadd.f32 %v2027_v41, %v1248_v52 }
 0x29f   :  { %1294 = vst.msk [vmem:[%s2223_s4 + $0x120] sm:$0xff] %vm1257_vm3, %v1249_v54 }

</bundles_post_ra>
